<compile_context>
chip_gen: v5e
topology: v5e:2x2
jax: 0.10.0
libtpu: 0.0.40
codegen_flags: <defaults>
</compile_context>

<pallas_src>
import functools

import jax
import jax.numpy as jnp
from jax.experimental import pallas as pl
from jax.experimental.pallas import tpu as pltpu


def _round_up(x, m):
    return ((x + m - 1) // m) * m


def _vmem_budget_bytes():
    """Physical VMEM minus headroom for compiler-internal scratch."""
    try:
        cap = int(pltpu.get_tpu_info().vmem_capacity_bytes)
    except Exception:
        cap = 64 << 20          # conservative fallback (v7x per-TensorCore VMEM)
    return max(32 << 20, cap - (16 << 20))


def _tap_groups(K, stride, dilation):
    """Group taps by (stride phase, sublane residue of the per-phase row offset).

    Tap k reads padded row j*stride + k*dilation for output j.  Writing
    k*dilation = stride*q + p, the tap reads phase p at row (j + q).  Grouping by
    (p, q % 8) lets one sublane-shifted operand load serve every tap in the group
    (the remaining per-tap slices are 8-aligned and cheap)."""
    groups = {}
    for k in range(K):
        off = k * dilation
        p, q = off % stride, off // stride
        groups.setdefault((p, q % 8), []).append((k, q))
    return sorted(groups.items())


def _choose_tiles(K, C_in_p, C_out_p, stride, dilation, L_out, out_itemsize,
                  budget, max_time_tile, max_cout_tile):
    """Pick (time tile TL, c_out tile TN) to fill the VMEM budget."""
    q_max = ((K - 1) * dilation) // stride
    Hp = _round_up(q_max, 8) if q_max > 0 else 0
    tl_min = max(8, Hp)
    tl_cap = max(tl_min, _round_up(L_out, 8))
    tl_pref = max(tl_min, min(tl_cap, _round_up(max_time_tile, 8)))

    def need_bytes(tl, tn):
        ph = tl + Hp
        return (2 * stride * ph * C_in_p * 2     # x window, double buffered, bf16
                + 2 * K * C_in_p * tn * 2        # weights, double buffered, bf16
                + 2 * 8 * tn * 4                 # bias (sublane padded), f32
                + 2 * tl * tn * out_itemsize     # output, double buffered
                + 2 * ph * C_in_p * 2            # live residue-shifted operands
                + 2 * tl * tn * 4                # f32 accumulator + dot result
                + (4 << 20))                     # staging / internal margin

    tn_opts = [t for t in (512, 256, 128)
               if t <= C_out_p and t <= max_cout_tile and C_out_p % t == 0]
    if not tn_opts:
        tn_opts = [128]
    best = None
    for tn in tn_opts:
        tl = tl_pref
        while True:
            if need_bytes(tl, tn) <= budget:
                if best is None or (tl, tn) > best:
                    best = (tl, tn)
                break
            if tl <= tl_min:
                break
            tl = max(tl_min, _round_up(tl // 2, 8))
    if best is None:        # pathological -- run with the smallest tiles anyway
        best = (tl_min, tn_opts[-1])
    TL, TN = best
    return TL, TN, Hp, need_bytes(TL, TN)


def _make_kernel(TL, TN, groups):
    def kernel(x_ref, w_ref, b_ref, o_ref):
        # x_ref : (stride, 1, PH, C_in_p) bf16 -- per-phase window for this time tile
        # w_ref : (K, C_in_p, TN)         bf16 -- BN scale pre-folded
        # b_ref : (1, TN)                 f32  -- conv bias + BN shift folded
        # o_ref : (1, TL, TN)             out dtype
        # Loop-carried accumulator (no per-tap VMEM scratch RMW); bias folded into init.
        acc = jnp.broadcast_to(b_ref[...], (TL, TN))
        for (phase, r), taps in groups:
            q_hi = max(q for _, q in taps)
            length = (q_hi - r) + TL              # multiple of 8
            # One sublane-shifted operand load per (phase, residue) group; the taps
            # inside the group use 8-aligned (cheap) sub-slices of it.
            # TODO(synk): route this shift through pltpu.roll (XLU) once verified;
            #             for now Mosaic lowers it as a shifted load.
            sub = x_ref[phase, 0, r:r + length, :]
            for k, q in taps:
                off = q - r                        # multiple of 8 -> aligned slice
                xk = sub if (off == 0 and length == TL) else sub[off:off + TL, :]
                acc = acc + jnp.dot(xk, w_ref[k],
                                    preferred_element_type=jnp.float32)
        # ReLU; Dropout(eval) = identity.
        o_ref[0] = jnp.maximum(acc, 0.0).astype(o_ref.dtype)
    return kernel


def jasper_sub_block_forward(
    x_ncl,              # (N, C_in, L)  -- PyTorch NCL layout
    conv_w,             # (C_out, C_in, K)
    conv_b,             # (C_out,)
    bn_gamma,           # (C_out,)
    bn_beta,            # (C_out,)
    bn_mean,            # (C_out,)
    bn_var,             # (C_out,)
    *,
    kernel_width,
    stride=1,
    dilation=1,
    eps=1e-5,
    out_dtype=jnp.bfloat16,   # bf16 out by default: halves output HBM/VMEM traffic
    max_time_tile=512,        # cap on output rows per grid step
    max_cout_tile=512,        # cap on output channels per grid step
):
    N, C_in, L = x_ncl.shape
    C_out = conv_w.shape[0]
    K = kernel_width
    pad = K // 2
    L_out = (L + 2 * pad - dilation * (K - 1) - 1) // stride + 1
    assert L_out > 0

    C_in_p = _round_up(C_in, 128)         # lane-dense / MXU-aligned channels
    C_out_p = _round_up(C_out, 128)
    out_dtype = jnp.dtype(out_dtype)

    budget = _vmem_budget_bytes()
    TL, TN, Hp, need = _choose_tiles(
        K, C_in_p, C_out_p, stride, dilation, L_out,
        out_dtype.itemsize, budget, max_time_tile, max_cout_tile)
    PH = TL + Hp                          # per-phase window rows per tile
    n_t = -(-L_out // TL)
    n_co = C_out_p // TN
    TB = TL * stride
    T_need = (n_t + 1) * TB               # padded time length (multiple of stride)

    # ---- activation layout: NCL -> NLC, bf16, channel pad, stride-phase windows ----
    # TODO(synk): keep NLC channel-padded bf16 activations across the whole Jasper
    #   stack so this transpose/pad/window pass happens (fused) once per model, not
    #   once per sub-block.
    x_nlc = jnp.transpose(x_ncl, (0, 2, 1))                        # (N, L, C_in)
    x_p = jnp.pad(x_nlc.astype(jnp.bfloat16),
                  ((0, 0), (pad, max(0, T_need - pad - L)), (0, C_in_p - C_in)))
    x_p = x_p[:, :T_need, :]                                       # (N, T_need, C_in_p)
    # De-interleave into stride phases: phase[p][m] = padded_row[m*stride + p].
    x_ph = x_p.reshape(N, T_need // stride, stride, C_in_p).transpose(0, 2, 1, 3)
    base = x_ph[:, :, :n_t * TL, :].reshape(N, stride, n_t, TL, C_in_p)
    if Hp > 0:
        halo = x_ph[:, :, TL:(n_t + 1) * TL, :].reshape(
            N, stride, n_t, TL, C_in_p)[:, :, :, :Hp, :]
        x_win = jnp.concatenate([base, halo], axis=3)              # (N, s, n_t, PH, C)
    else:
        x_win = base                                               # K == 1: no halo
    x_win = x_win.reshape(N * stride, n_t, PH, C_in_p)

    # ---- parameter folding: BN scale into weights, BN shift + conv bias into bias ---
    scale = (bn_gamma.astype(jnp.float32)
             / jnp.sqrt(bn_var.astype(jnp.float32) + eps))          # (C_out,)
    w_folded = conv_w.astype(jnp.float32) * scale[:, None, None]    # (C_out, C_in, K)
    w_kic = jnp.transpose(w_folded, (2, 1, 0))                      # (K, C_in, C_out)
    w_kic = jnp.pad(w_kic, ((0, 0), (0, C_in_p - C_in), (0, C_out_p - C_out)))
    w_kic = w_kic.astype(jnp.bfloat16)
    bias = (conv_b.astype(jnp.float32) - bn_mean.astype(jnp.float32)) * scale \
        + bn_beta.astype(jnp.float32)
    bias = jnp.pad(bias, (0, C_out_p - C_out)).reshape(1, C_out_p)  # f32

    kernel = _make_kernel(TL, TN, _tap_groups(K, stride, dilation))
    vmem_limit = int(min(budget, max(need + (8 << 20), 32 << 20)))

    out = pl.pallas_call(
        kernel,
        out_shape=jax.ShapeDtypeStruct((N, n_t * TL, C_out_p), out_dtype),
        grid_spec=pltpu.PrefetchScalarGridSpec(
            num_scalar_prefetch=0,
            # c_out tile outer, time inner: the weight block stays resident across
            # the whole time axis of each c_out tile.
            grid=(N, n_co, n_t),
            in_specs=[
                pl.BlockSpec((stride, 1, PH, C_in_p), lambda n, c, t: (n, t, 0, 0)),
                pl.BlockSpec((K, C_in_p, TN), lambda n, c, t: (0, 0, c)),
                pl.BlockSpec((1, TN), lambda n, c, t: (0, c)),
            ],
            out_specs=pl.BlockSpec((1, TL, TN), lambda n, c, t: (n, t, c)),
        ),
        compiler_params=pltpu.CompilerParams(
            dimension_semantics=("parallel", "parallel", "parallel"),
            vmem_limit_bytes=vmem_limit,
        ),
    )(x_win, w_kic, bias)

    out = out[:, :L_out, :C_out]                   # drop time/channel padding
    return jnp.transpose(out, (0, 2, 1))           # (N, C_out, L_out)


def _reference_forward(x_ncl, conv_w, conv_b, gamma, beta, mean, var, *,
                       kernel_width, stride=1, dilation=1, eps=1e-5,
                       match_bf16=False):
    """Pure-JAX reference (eval-mode Conv1d + BN + ReLU).

    match_bf16=True feeds the reference the same bf16-rounded x / folded weights
    the kernel uses, so remaining differences are accumulation-order only."""
    pad = kernel_width // 2
    scale = gamma / jnp.sqrt(var + eps)
    w = conv_w.astype(jnp.float32) * scale[:, None, None]
    b = (conv_b - mean) * scale + beta
    x = x_ncl.astype(jnp.float32)
    if match_bf16:
        x = x.astype(jnp.bfloat16).astype(jnp.float32)
        w = w.astype(jnp.bfloat16).astype(jnp.float32)
    y = jax.lax.conv_general_dilated(
        x, w, window_strides=(stride,), padding=[(pad, pad)],
        rhs_dilation=(dilation,), dimension_numbers=("NCH", "OIH", "NCH"),
        precision=jax.lax.Precision.HIGHEST,
    ) + b.reshape(1, -1, 1)
    return jnp.maximum(y, 0.0)


def _run_case(name, key, *, N, C_in, C_out, L, K, stride=1, dilation=1,
              max_time_tile=8, max_cout_tile=512):
    k_x, k_w, k_b, k_g, k_be = jax.random.split(key, 5)
    x = jax.random.normal(k_x, (N, C_in, L), dtype=jnp.float32)
    conv_w = 0.1 * jax.random.normal(k_w, (C_out, C_in, K), dtype=jnp.float32)
    conv_b = 0.1 * jax.random.normal(k_b, (C_out,), dtype=jnp.float32)
    gamma = 1.0 + 0.05 * jax.random.normal(k_g, (C_out,), dtype=jnp.float32)
    beta = 0.05 * jax.random.normal(k_be, (C_out,), dtype=jnp.float32)
    mean = jnp.zeros((C_out,), jnp.float32)   # running_mean init
    var = jnp.ones((C_out,), jnp.float32)     # running_var init

    fwd = jax.jit(functools.partial(
        jasper_sub_block_forward, kernel_width=K, stride=stride, dilation=dilation,
        max_time_tile=max_time_tile, max_cout_tile=max_cout_tile))
    out = jax.block_until_ready(fwd(x, conv_w, conv_b, gamma, beta, mean, var))
    out_f32 = out.astype(jnp.float32)

    kw = dict(kernel_width=K, stride=stride, dilation=dilation)
    ref_bf16 = _reference_forward(x, conv_w, conv_b, gamma, beta, mean, var,
                                  match_bf16=True, **kw)
    ref_f32 = _reference_forward(x, conv_w, conv_b, gamma, beta, mean, var,
                                 match_bf16=False, **kw)
    assert out.shape == ref_f32.shape, (name, out.shape, ref_f32.shape)
    # Tight check vs a reference fed the same bf16-rounded operands (bf16 output).
    assert jnp.allclose(out_f32, ref_bf16, atol=2e-2, rtol=2e-2), (
        name, float(jnp.max(jnp.abs(out_f32 - ref_bf16))))
    # Looser semantic check vs the pure-f32 module math.
    assert jnp.allclose(out_f32, ref_f32, atol=5e-2, rtol=5e-2), (
        name, float(jnp.max(jnp.abs(out_f32 - ref_f32))))


if __name__ == "__main__":
    key = jax.random.PRNGKey(0)
    k1, k2, k3, k4 = jax.random.split(key, 4)
    # Small shapes; max_time_tile=8 forces multiple time tiles (halo path exercised).
    _run_case("k5_s1_d1", k1, N=2, C_in=4, C_out=8, L=16, K=5)
    # stride=2 exercises the phase de-interleave path.
    _run_case("k7_s2_d1", k2, N=2, C_in=8, C_out=16, L=32, K=7, stride=2)
    # dilation=2 exercises multi-tap residue groups.
    _run_case("k5_s1_d2", k3, N=2, C_in=4, C_out=8, L=16, K=5, dilation=2)
    # C_out > 128 with a forced 128-wide tile exercises the c_out grid axis.
    _run_case("k3_cotile", k4, N=1, C_in=8, C_out=160, L=16, K=3, max_cout_tile=128)
    print("KERNEL_OK")
</pallas_src>

<mosaic_0001>
module attributes {stable_mosaic.version = 11 : i64} {
  func.func @kernel(%arg0: i32, %arg1: i32, %arg2: i32, %arg3: memref<1x1x16x128xbf16, #tpu.memory_space<vmem>>, %arg4: memref<5x128x128xbf16, #tpu.memory_space<vmem>>, %arg5: memref<1x128xf32, #tpu.memory_space<vmem>>, %arg6: memref<1x8x128xbf16, #tpu.memory_space<vmem>>) attributes {dimension_semantics = [#tpu.dimension_semantics<parallel>, #tpu.dimension_semantics<parallel>, #tpu.dimension_semantics<parallel>], iteration_bounds = array<i64: 2, 1, 2>, scalar_prefetch = 0 : i64, scratch_operands = 0 : i64, tpu.core_type = #tpu.core_type<tc>, window_params = [{transform_indices = @transform_0, window_bounds = array<i64: 1, 1, 16, 128>}, {transform_indices = @transform_1, window_bounds = array<i64: 5, 128, 128>}, {transform_indices = @transform_2, window_bounds = array<i64: 1, 128>}, {transform_indices = @transform_3, window_bounds = array<i64: 1, 8, 128>}]} {
    %c0 = arith.constant 0 : index
    %c0_0 = arith.constant 0 : index
    %0 = vector.load %arg5[%c0, %c0_0] : memref<1x128xf32, #tpu.memory_space<vmem>>, vector<1x128xf32>
    %1 = vector.shape_cast %0 : vector<1x128xf32> to vector<1x128xf32>
    %2 = vector.broadcast %1 : vector<1x128xf32> to vector<8x128xf32>
    %c0_1 = arith.constant 0 : index
    %c0_2 = arith.constant 0 : index
    %c0_3 = arith.constant 0 : index
    %c0_4 = arith.constant 0 : index
    %3 = vector.load %arg3[%c0_1, %c0_2, %c0_3, %c0_4] : memref<1x1x16x128xbf16, #tpu.memory_space<vmem>>, vector<1x1x8x128xbf16>
    %4 = vector.shape_cast %3 : vector<1x1x8x128xbf16> to vector<8x128xbf16>
    %c0_5 = arith.constant 0 : index
    %c0_6 = arith.constant 0 : index
    %c0_7 = arith.constant 0 : index
    %5 = vector.load %arg4[%c0_5, %c0_6, %c0_7] : memref<5x128x128xbf16, #tpu.memory_space<vmem>>, vector<1x128x128xbf16>
    %6 = vector.shape_cast %5 : vector<1x128x128xbf16> to vector<128x128xbf16>
    %cst = arith.constant dense<0.000000e+00> : vector<8x128xf32>
    %7 = tpu.matmul %4, %6, %cst {dimension_numbers = #tpu.dot_dimension_numbers<[1], [0], [0], [1], [0, 0, 1, 1], [], []>} : vector<8x128xbf16>, vector<128x128xbf16>, vector<8x128xf32> -> vector<8x128xf32>
    %8 = arith.addf %2, %7 : vector<8x128xf32>
    %c0_8 = arith.constant 0 : index
    %c0_9 = arith.constant 0 : index
    %c1 = arith.constant 1 : index
    %c0_10 = arith.constant 0 : index
    %9 = vector.load %arg3[%c0_8, %c0_9, %c1, %c0_10] : memref<1x1x16x128xbf16, #tpu.memory_space<vmem>>, vector<1x1x8x128xbf16>
    %10 = vector.shape_cast %9 : vector<1x1x8x128xbf16> to vector<8x128xbf16>
    %c1_11 = arith.constant 1 : index
    %c0_12 = arith.constant 0 : index
    %c0_13 = arith.constant 0 : index
    %11 = vector.load %arg4[%c1_11, %c0_12, %c0_13] : memref<5x128x128xbf16, #tpu.memory_space<vmem>>, vector<1x128x128xbf16>
    %12 = vector.shape_cast %11 : vector<1x128x128xbf16> to vector<128x128xbf16>
    %cst_14 = arith.constant dense<0.000000e+00> : vector<8x128xf32>
    %13 = tpu.matmul %10, %12, %cst_14 {dimension_numbers = #tpu.dot_dimension_numbers<[1], [0], [0], [1], [0, 0, 1, 1], [], []>} : vector<8x128xbf16>, vector<128x128xbf16>, vector<8x128xf32> -> vector<8x128xf32>
    %14 = arith.addf %8, %13 : vector<8x128xf32>
    %c0_15 = arith.constant 0 : index
    %c0_16 = arith.constant 0 : index
    %c2 = arith.constant 2 : index
    %c0_17 = arith.constant 0 : index
    %15 = vector.load %arg3[%c0_15, %c0_16, %c2, %c0_17] : memref<1x1x16x128xbf16, #tpu.memory_space<vmem>>, vector<1x1x8x128xbf16>
    %16 = vector.shape_cast %15 : vector<1x1x8x128xbf16> to vector<8x128xbf16>
    %c2_18 = arith.constant 2 : index
    %c0_19 = arith.constant 0 : index
    %c0_20 = arith.constant 0 : index
    %17 = vector.load %arg4[%c2_18, %c0_19, %c0_20] : memref<5x128x128xbf16, #tpu.memory_space<vmem>>, vector<1x128x128xbf16>
    %18 = vector.shape_cast %17 : vector<1x128x128xbf16> to vector<128x128xbf16>
    %cst_21 = arith.constant dense<0.000000e+00> : vector<8x128xf32>
    %19 = tpu.matmul %16, %18, %cst_21 {dimension_numbers = #tpu.dot_dimension_numbers<[1], [0], [0], [1], [0, 0, 1, 1], [], []>} : vector<8x128xbf16>, vector<128x128xbf16>, vector<8x128xf32> -> vector<8x128xf32>
    %20 = arith.addf %14, %19 : vector<8x128xf32>
    %c0_22 = arith.constant 0 : index
    %c0_23 = arith.constant 0 : index
    %c3 = arith.constant 3 : index
    %c0_24 = arith.constant 0 : index
    %21 = vector.load %arg3[%c0_22, %c0_23, %c3, %c0_24] : memref<1x1x16x128xbf16, #tpu.memory_space<vmem>>, vector<1x1x8x128xbf16>
    %22 = vector.shape_cast %21 : vector<1x1x8x128xbf16> to vector<8x128xbf16>
    %c3_25 = arith.constant 3 : index
    %c0_26 = arith.constant 0 : index
    %c0_27 = arith.constant 0 : index
    %23 = vector.load %arg4[%c3_25, %c0_26, %c0_27] : memref<5x128x128xbf16, #tpu.memory_space<vmem>>, vector<1x128x128xbf16>
    %24 = vector.shape_cast %23 : vector<1x128x128xbf16> to vector<128x128xbf16>
    %cst_28 = arith.constant dense<0.000000e+00> : vector<8x128xf32>
    %25 = tpu.matmul %22, %24, %cst_28 {dimension_numbers = #tpu.dot_dimension_numbers<[1], [0], [0], [1], [0, 0, 1, 1], [], []>} : vector<8x128xbf16>, vector<128x128xbf16>, vector<8x128xf32> -> vector<8x128xf32>
    %26 = arith.addf %20, %25 : vector<8x128xf32>
    %c0_29 = arith.constant 0 : index
    %c0_30 = arith.constant 0 : index
    %c4 = arith.constant 4 : index
    %c0_31 = arith.constant 0 : index
    %27 = vector.load %arg3[%c0_29, %c0_30, %c4, %c0_31] : memref<1x1x16x128xbf16, #tpu.memory_space<vmem>>, vector<1x1x8x128xbf16>
    %28 = vector.shape_cast %27 : vector<1x1x8x128xbf16> to vector<8x128xbf16>
    %c4_32 = arith.constant 4 : index
    %c0_33 = arith.constant 0 : index
    %c0_34 = arith.constant 0 : index
    %29 = vector.load %arg4[%c4_32, %c0_33, %c0_34] : memref<5x128x128xbf16, #tpu.memory_space<vmem>>, vector<1x128x128xbf16>
    %30 = vector.shape_cast %29 : vector<1x128x128xbf16> to vector<128x128xbf16>
    %cst_35 = arith.constant dense<0.000000e+00> : vector<8x128xf32>
    %31 = tpu.matmul %28, %30, %cst_35 {dimension_numbers = #tpu.dot_dimension_numbers<[1], [0], [0], [1], [0, 0, 1, 1], [], []>} : vector<8x128xbf16>, vector<128x128xbf16>, vector<8x128xf32> -> vector<8x128xf32>
    %32 = arith.addf %26, %31 : vector<8x128xf32>
    %cst_36 = arith.constant 0.000000e+00 : f32
    %33 = vector.broadcast %cst_36 : f32 to vector<8x128xf32>
    %34 = arith.maximumf %32, %33 : vector<8x128xf32>
    %35 = arith.truncf %34 : vector<8x128xf32> to vector<8x128xbf16>
    %c0_37 = arith.constant 0 : index
    %c0_38 = arith.constant 0 : index
    %c0_39 = arith.constant 0 : index
    %36 = vector.load %arg6[%c0_37, %c0_38, %c0_39] : memref<1x8x128xbf16, #tpu.memory_space<vmem>>, vector<1x8x128xbf16>
    %37 = vector.shape_cast %36 : vector<1x8x128xbf16> to vector<8x128xbf16>
    %38 = vector.shape_cast %35 : vector<8x128xbf16> to vector<1x8x128xbf16>
    tpu.vector_store %arg6[%c0_37, %c0_38, %c0_39], %38 {strides = array<i32>} : memref<1x8x128xbf16, #tpu.memory_space<vmem>>, vector<1x8x128xbf16>,
    return
  }
  func.func @transform_0(%arg0: i32, %arg1: i32, %arg2: i32) -> (i32, i32, i32, i32) {
    %c0_i32 = arith.constant 0 : i32
    %c0_i32_0 = arith.constant 0 : i32
    %c0_i32_1 = arith.constant 0 : i32
    return %arg0, %arg2, %c0_i32, %c0_i32_0 : i32, i32, i32, i32
  }
  func.func @transform_1(%arg0: i32, %arg1: i32, %arg2: i32) -> (i32, i32, i32) {
    %c0_i32 = arith.constant 0 : i32
    %c0_i32_0 = arith.constant 0 : i32
    %c0_i32_1 = arith.constant 0 : i32
    return %c0_i32, %c0_i32_0, %arg1 : i32, i32, i32
  }
  func.func @transform_2(%arg0: i32, %arg1: i32, %arg2: i32) -> (i32, i32) {
    %c0_i32 = arith.constant 0 : i32
    %c0_i32_0 = arith.constant 0 : i32
    return %c0_i32, %arg1 : i32, i32
  }
  func.func @transform_3(%arg0: i32, %arg1: i32, %arg2: i32) -> (i32, i32, i32) {
    %c0_i32 = arith.constant 0 : i32
    return %arg0, %arg2, %arg1 : i32, i32, i32
  }
}

</mosaic_0001>

<bundles_post_ra>
// kernel: jasper_sub_block_forward.1
= control target key start
LH: loop header
LB: loop body
LE: loop exit
PB: predicated region body
PF: predicated region fallthrough
CT: control target
= control target key end

     0   :  { %s1202_s12 = smov 0   ;;  %s1204_s13 = smov 0   ;;  %s1399_s0 = inlined_call_operand.vmem [shape: bf16[2,2,16,128], index: 0, kind: input, shape index: {}]   ;;  %s1400_s1 = inlined_call_operand.vmem [shape: bf16[5,128,128], index: 1, kind: input, shape index: {}]   ;;  %s1401_s2 = inlined_call_operand.vmem [shape: f32[1,128], index: 2, kind: input, shape index: {}]   ;;  %s1402_s3 = inlined_call_operand.vmem [shape: bf16[2,16,128], index: 3, kind: output, shape index: {}]  }
   0x1   :  { %s1206_s14 = smov 0   ;;  %s1208_s15 = smov 0  }
   0x2   :  { %s1210_s16 = smov 0  }
   0x3 LB: > { %s25_s17 = sadd.s32 1, %s1172_s14  ;;  %s32_s18 = sadd.s32 1, %s1176_s15  ;;  %s1180_s16 = sphi %s1210_s16, %s13_s16   ;;  %s1176_s15 = sphi %s1208_s15, %s1406_s15   ;;  %s1172_s14 = sphi %s1206_s14, %s1405_s14   ;;  %s1168_s13 = sphi %s1204_s13, %s1404_s13   ;;  %s1164_s12 = sphi %s1202_s12, %s1403_s12  }
   0x4   : > { %p26_p0 = scmp.ge.s32.totalorder %s25_s17, 2  ;;  %p829_p1 = scmp.ge.s32.totalorder %s1180_s16, 1 }
   0x5   : > { %p183_p2 = scmp.lt.s32.totalorder %s1180_s16, 5 }
   0x6   : > { %s1408_s17 = smov (%p26_p0, %s25_s17), 0  ;;  %s1410_s18 = smov (!%p26_p0, %s32_s18), %s1176_s15 }
   0x7   : > { %p184_p3 = pnand %p829_p1, %p183_p2  ;;  %p34_p4 = scmp.ge.s32.totalorder %s1410_s18, 2 }
   0x8   : > { %p224_p5 = scmp.lt.s32.totalorder (!%p184_p3), %s1168_s13, 1  ;;  %p226_p6 = scmp.lt.s32.totalorder (!%p184_p3), %s1164_s12, 1 }
   0x9   : > { %s1412_s18 = smov (%p34_p4, %s1410_s18), 0  ;;  %187 = sbr.rel (%p184_p3) target bundleno = 212 (0xd4), region = 32 }
   0xe   : > { %v1068_v0 = vld [vmem:[%s1400_s1 + $0x38] sm:$0xff]  ;;  %v1067_v3 = vld [vmem:[%s1400_s1 + $0x30] sm:$0xff]  ;;  %s1414_s13 = smov (!%p224_p5, %s1168_s13), 1  ;;  %s1416_s12 = smov (!%p226_p6, %s1164_s12), 1  ;;  %v1066_v8 = vld [vmem:[%s1400_s1 + $0x28] sm:$0xff] }
   0xf   : > { %v1084_v1 = vld [vmem:[%s1400_s1 + $0xb8] sm:$0xff]  ;;  %320 = vmatpush.bf16.msra.mxu0 %v1068_v0  ;;  %v1083_v5 = vld [vmem:[%s1400_s1 + $0xb0] sm:$0xff]  ;;  %s831_s8 = sshll.u32 %s1414_s13, 2  ;;  %s830_s9 = sshll.u32 %s1416_s12, 1  ;;  %v1082_v9 = vld [vmem:[%s1400_s1 + $0xa8] sm:$0xff] }
  0x10   : > { %v1092_v2 = vld [vmem:[%s1400_s1 + $0xf8] sm:$0xff]  ;;  %499 = vmatpush.bf16.msra.mxu2 %v1084_v1  ;;  %v1091_v6 = vld [vmem:[%s1400_s1 + $0xf0] sm:$0xff]  ;;  %s230_s19 = sadd.s32 %s831_s8, %s830_s9  ;;  %v1090_v10 = vld [vmem:[%s1400_s1 + $0xe8] sm:$0xff]  ;;  %s833_s22 = sshll.u32 %s1414_s13, 1 }
  0x11   : > { %v1076_v4 = vld [vmem:[%s1400_s1 + $0x78] sm:$0xff]  ;;  %591 = vmatpush.bf16.msra.mxu3 %v1092_v2  ;;  %v1075_v7 = vld [vmem:[%s1400_s1 + $0x70] sm:$0xff]  ;;  %s832_s24 = sshll.u32 %s230_s19, 2  ;;  %v1074_v11 = vld [vmem:[%s1400_s1 + $0x68] sm:$0xff]  ;;  %s248_s25 = sadd.s32 %s833_s22, %s1416_s12 }
  0x12   : > { %414 = vmatpush.bf16.msra.mxu1 %v1076_v4  ;;  %s1277_s29 = scalar_lea.vmem %s1399_s0, %s832_s24  ;;  %v1065_v12 = vld [vmem:[%s1400_s1 + $0x20] sm:$0xff]  ;;  %v1064_v20 = vld [vmem:[%s1400_s1 + $0x18] sm:$0xff]  ;;  %v1063_v28 = vld [vmem:[%s1400_s1 + $0x10] sm:$0xff] }
  0x13   : > { %321 = vmatpush.bf16.msra.mxu0 %v1067_v3  ;;  %v1081_v13 = vld [vmem:[%s1400_s1 + $0xa0] sm:$0xff]  ;;  %v1080_v21 = vld [vmem:[%s1400_s1 + $0x98] sm:$0xff]  ;;  %v1079_v29 = vld [vmem:[%s1400_s1 + $0x90] sm:$0xff] }
  0x14   : > { %500 = vmatpush.bf16.msra.mxu2 %v1083_v5  ;;  %v1089_v14 = vld [vmem:[%s1400_s1 + $0xe0] sm:$0xff]  ;;  %v1088_v22 = vld [vmem:[%s1400_s1 + $0xd8] sm:$0xff]  ;;  %v1087_v30 = vld [vmem:[%s1400_s1 + $0xd0] sm:$0xff] }
  0x15   : > { %592 = vmatpush.bf16.msra.mxu3 %v1091_v6  ;;  %v1073_v15 = vld [vmem:[%s1400_s1 + $0x60] sm:$0xff]  ;;  %v1072_v25 = vld [vmem:[%s1400_s1 + $0x58] sm:$0xff]  ;;  %v1071_v32 = vld [vmem:[%s1400_s1 + $0x50] sm:$0xff] }
  0x16   : > { %415 = vmatpush.bf16.msra.mxu1 %v1075_v7  ;;  %v428_v16 = vld [vmem:[%s1277_s29] sm:$0xe]  ;;  %v335_v17 = vld [vmem:[%s1277_s29 + $0x4] sm:$0x1]  ;;  %v1062_v34 = vld [vmem:[%s1400_s1 + $0x8] sm:$0xff] }
  0x17   : > { %322 = vmatpush.bf16.msra.mxu0 %v1066_v8  ;;  %v1294_v18 = vld [vmem:[%s1277_s29 + $0x4] sm:$0x3]  ;;  %v334_v19 = vld [vmem:[%s1277_s29] sm:$0xf]  ;;  %v447_v23 = vunpack.c.l.b16 %v428_v16  ;;  %v356_v26 = vunpack.c.l.b16 %v335_v17  ;;  %v1078_v35 = vld [vmem:[%s1400_s1 + $0x88] sm:$0xff] }
  0x18   : > { %501 = vmatpush.bf16.msra.mxu2 %v1082_v9  ;;  %v532_v24 = vunpack.c.l.b16 %v1294_v18  ;;  %v355_v27 = vunpack.c.l.b16 %v334_v19  ;;  %v1086_v36 = vld [vmem:[%s1400_s1 + $0xc8] sm:$0xff]  ;;  %v1061_v41 = vld [vmem:[%s1400_s1] sm:$0xff]  ;;  %v1100_v43 = vld [vmem:[%s1400_s1 + $0x138] sm:$0xff] }
  0x19   : > { %593 = vmatpush.bf16.msra.mxu3 %v1090_v10  ;;  %v1070_v39 = vld [vmem:[%s1400_s1 + $0x48] sm:$0xff]  ;;  %v448_v42 = vpack.c.b16 %v356_v26, %v447_v23  ;;  %v1077_v44 = vld [vmem:[%s1400_s1 + $0x80] sm:$0xff]  ;;  %v1099_v53 = vld [vmem:[%s1400_s1 + $0x130] sm:$0xff] }
  0x1a   : > { %416 = vmatpush.bf16.msra.mxu1 %v1074_v11  ;;  %v533_v31 = vpack.c.b16 %v532_v24, %v447_v23  ;;  %v357_v33 = vpack.c.b16 %v356_v26, %v355_v27  ;;  %v1085_v47 = vld [vmem:[%s1400_s1 + $0xc0] sm:$0xff]  ;;  %v1098_v56 = vld [vmem:[%s1400_s1 + $0x128] sm:$0xff]  ;;  %v1096_v58 = vld [vmem:[%s1400_s1 + $0x118] sm:$0xff] }
  0x1b   : > { %323 = vmatpush.bf16.msra.mxu0 %v1065_v12  ;;  %v1069_v48 = vld [vmem:[%s1400_s1 + $0x40] sm:$0xff]  ;;  %v449_v52 = vrot.slane %v448_v42, 1  ;;  %v1095_v59 = vld [vmem:[%s1400_s1 + $0x110] sm:$0xff]  ;;  %v1094_v62 = vld [vmem:[%s1400_s1 + $0x108] sm:$0xff] }
  0x1c   : > { %502 = vmatpush.bf16.msra.mxu2 %v1081_v13  ;;  %v535_v37 = vshrl.u32 %v533_v31, 16  ;;  %v538_v38 = vshll.u32 %v533_v31, 16  ;;  %v361_v40 = vshll.u32 %v357_v33, 16  ;;  %v359_v49 = vshrl.u32 %v357_v33, 16  ;;  %v255_v51 = vld [vmem:[%s1277_s29] sm:$0xf] }
  0x1d   : > { %594 = vmatpush.bf16.msra.mxu3 %v1089_v14  ;;  %v1097_v57 = vld [vmem:[%s1400_s1 + $0x120] sm:$0xff] }
  0x1e   : > { %417 = vmatpush.bf16.msra.mxu1 %v1073_v15  ;;  %v537_v45 = vrot.slane %v535_v37, 1  ;;  %v540_v46 = vrot.slane %v538_v38, 2  ;;  %v363_v50 = vrot.slane %v361_v40, 1  ;;  %v605_v60 = vld [vmem:[%s1277_s29] sm:$0xc]  ;;  %s834_s29 = sshll.u32 %s248_s25, 2 }
  0x1f   : > { %324 = vmatpush.bf16.msra.mxu0 %v1064_v20  ;;  %v624_v61 = vunpack.c.l.b16 %v605_v60  ;;  %v1093_v0 = vld [vmem:[%s1400_s1 + $0x100] sm:$0xff]  ;;  %s250_s6 = scalar_lea.vmem %s1402_s3, %s834_s29 }
  0x20   : > { %503 = vmatpush.bf16.msra.mxu2 %v1080_v21  ;;  %v541_v54 = vor.u32 %v540_v46, %v537_v45  ;;  %v364_v55 = vor.u32 %v363_v50, %v359_v49  ;;  %v1141_v8 = vld [vmem:[%s1401_s2] ss:$0 sm:$0xff] }
  0x21   : > { %595 = vmatpush.bf16.msra.mxu3 %v1088_v22  ;;  %v625_v63 = vpack.c.b16 %v532_v24, %v624_v61 }
  0x22   : > { %418 = vmatpush.bf16.msra.mxu1 %v1072_v25 }
  0x23   : > { %325 = vmatpush.bf16.msra.mxu0 %v1063_v28  ;;  %v626_v1 = vrot.slane %v625_v63, 2 }
  0x24   : > { %504 = vmatpush.bf16.msra.mxu2 %v1079_v29 }
  0x25   : > { %596 = vmatpush.bf16.msra.mxu3 %v1087_v30 }
  0x26   : > { %419 = vmatpush.bf16.msra.mxu1 %v1071_v32 }
  0x27   : > { %326 = vmatpush.bf16.msra.mxu0 %v1062_v34 }
  0x28   : > { %505 = vmatpush.bf16.msra.mxu2 %v1078_v35 }
  0x29   : > { %597 = vmatpush.bf16.msra.mxu3 %v1086_v36 }
  0x2a   : > { %420 = vmatpush.bf16.msra.mxu1 %v1070_v39 }
  0x2b   : > { %327 = vmatpush.bf16.msra.mxu0 %v1061_v41 }
  0x2c   : > { %506 = vmatpush.bf16.msra.mxu2 %v1077_v44 }
  0x2d   : > { %598 = vmatpush.bf16.msra.mxu3 %v1085_v47 }
  0x2e   : > { %421 = vmatpush.bf16.msra.mxu1 %v1069_v48  ;;  %328 = vmatmul.bf16.vlgmr.msra.gmra.mxu0 %v255_v51 }
  0x2f   : > { %676 = vmatpush.bf16.msrb.mxu0 %v1100_v43  ;;  %507 = vmatmul.bf16.vlgmr.msra.gmra.mxu2 %v449_v52 }
  0x30   : > { %599 = vmatmul.bf16.vlgmr.msra.gmra.mxu3 %v541_v54 }
  0x31   : > { %422 = vmatmul.bf16.vlgmr.msra.gmra.mxu1 %v364_v55 }
  0x33   : > { %677 = vmatpush.bf16.msrb.mxu0 %v1099_v53 }
  0x37   : > { %678 = vmatpush.bf16.msrb.mxu0 %v1098_v56 }
  0x3b   : > { %679 = vmatpush.bf16.msrb.mxu0 %v1097_v57 }
  0x3f   : > { %680 = vmatpush.bf16.msrb.mxu0 %v1096_v58 }
  0x43   : > { %681 = vmatpush.bf16.msrb.mxu0 %v1095_v59 }
  0x47   : > { %682 = vmatpush.bf16.msrb.mxu0 %v1094_v62 }
  0x4b   : > { %683 = vmatpush.bf16.msrb.mxu0 %v1093_v0 }
  0x4e   : > { %684 = vmatmul.bf16.vlgmr.msrb.gmra.mxu0 %v626_v1 }
  0xab   : > { %v329_v2 = vpop.f32.mrf.mxu0 }
  0xac   : > { %v333_v10 = vadd.f32 %v1141_v8, %v329_v2 }
  0xae   : > { %v423_v3 = vpop.f32.mrf.mxu1 }
  0xaf   : > { %v427_v12 = vadd.f32 %v423_v3, %v333_v10 }
  0xb2   : > { %v508_v4 = vpop.f32.mrf.mxu2 }
  0xb3   : > { %v331_v5 = vpop.f32.mrf.mxu0  ;;  %v600_v6 = vpop.f32.mrf.mxu3  ;;  %v512_v13 = vadd.f32 %v508_v4, %v427_v12 }
  0xb5   : > { %v604_v14 = vadd.f32 %v600_v6, %v512_v13 }
  0xb6   : > { %v425_v7 = vpop.f32.mrf.mxu1 }
  0xba   : > { %v510_v9 = vpop.f32.mrf.mxu2 }
  0xbb   : > { %v602_v11 = vpop.f32.mrf.mxu3 }
  0xcb   : > { %v685_v15 = vpop.f32.mrf.mxu0 }
  0xcc   : > { %v689_v16 = vadd.f32 %v685_v15, %v604_v14 }
  0xce   : > { %v690_v17 = vmax.f32 %v689_v16, 0.0 }
  0xd0   : > { %v691_v18 = vpack.c.bf16 %v690_v17, %v690_v17 }
  0xd2   : > { %692 = vst [vmem:[%s250_s6] sm:$0xf] %v691_v18 }
  0xd3   : > { %v687_v19 = vpop.f32.mrf.mxu0 }
  0xd4 PF: > { %s13_s16 = sadd.s32 1, %s1180_s16   ;;  %s1403_s12 = smov %s1172_s14 }
  0xd5   : > { %p10_p7 = scmp.ge.s32.totalorder %s13_s16, 6   ;;  %s1404_s13 = smov %s1176_s15 }
  0xd6   : > { %s1405_s14 = smov %s1408_s17  ;;  %s1406_s15 = smov %s1412_s18 }
  0xd7   :  { %12 = sbr.rel (!%p10_p7) target bundleno = 3 (0x3), region = 72 }

</bundles_post_ra>
